<compile_context>
chip_gen: v7x
topology: tpu7x:2x2x1
jax: 0.10.0
libtpu: 0.0.40
codegen_flags: <defaults>
</compile_context>

<pallas_src>
import jax
import jax.numpy as jnp
from jax.experimental import pallas as pl
from jax.experimental.pallas import tpu as pltpu


def _resolve_shape(total, shape):
    shape = list(shape)
    if -1 in shape:
        idx = shape.index(-1)
        known = 1
        for i, s in enumerate(shape):
            if i != idx:
                known *= s
        assert known > 0 and total % known == 0, "cannot resolve -1 in view shape"
        shape[idx] = total // known
    prod = 1
    for s in shape:
        prod *= s
    assert prod == total, f"view shape {tuple(shape)} incompatible with {total} elements"
    return tuple(shape)


def _make_dma_copy_kernel(n_chunks):
    """Kernel: issue n_chunks concurrent HBM->HBM DMAs, then wait for all."""

    def kernel(x_hbm, o_hbm, sems):
        copies = [
            pltpu.make_async_copy(x_hbm.at[c], o_hbm.at[c], sems.at[c])
            for c in range(n_chunks)
        ]
        for cp in copies:   # start all DMAs (concurrent engines)
            cp.start()
        for cp in copies:   # then wait for completion
            cp.wait()

    return kernel


def _choose_chunks(total, itemsize, override=None):
    if override is not None:
        return override if (override >= 1 and total % override == 0) else 1
    total_bytes = total * itemsize
    # Only bother splitting once each chunk is comfortably large (>= 8 MiB);
    # below that a single DMA already saturates HBM bandwidth.
    for c in (4, 2):
        if total % c == 0 and (total_bytes // c) >= (8 << 20):
            return c
    return 1


def _dma_copy_flat(flat, n_chunks=None):
    """HBM -> HBM copy of a 1-D array of arbitrary length via async DMA."""
    total = flat.shape[0]
    dtype = flat.dtype
    itemsize = jnp.dtype(dtype).itemsize

    n = _choose_chunks(total, itemsize, n_chunks)
    chunk = total // n
    x2 = flat.reshape(n, chunk)

    out2 = pl.pallas_call(
        _make_dma_copy_kernel(n),
        out_shape=jax.ShapeDtypeStruct((n, chunk), dtype),
        in_specs=[pl.BlockSpec(memory_space=pl.ANY)],   # raw HBM ref, no auto-DMA
        out_specs=pl.BlockSpec(memory_space=pl.ANY),    # raw HBM ref, no auto-DMA
        scratch_shapes=[pltpu.SemaphoreType.DMA((n,))],
        cost_estimate=pl.CostEstimate(
            flops=0, transcendentals=0, bytes_accessed=2 * total * itemsize
        ),
    )(x2)
    return out2.reshape(-1)


def view_pallas(x, shape):
    """Equivalent of View(shape)(x) == x.view(*shape) for a contiguous tensor."""
    total = x.size
    target = _resolve_shape(total, shape)

    if total == 0:
        return jnp.zeros(target, dtype=x.dtype)

    # Row-major flatten (same element order PyTorch's .view relies on); this is
    # metadata-only for a contiguous array.
    flat = x.reshape(-1)
    out_flat = _dma_copy_flat(flat)
    return out_flat.reshape(target)


class ViewPallas:
    """Mirror of the PyTorch nn.Module `View` (no parameters)."""

    def __init__(self, shape):
        self.shape = shape

    def __call__(self, x):
        return view_pallas(x, self.shape)


if __name__ == "__main__":
    key = jax.random.PRNGKey(0)

    # NCHW conv-style activation: batch=2, channels=4, spatial=16x16.
    x = jax.random.normal(key, (2, 4, 16, 16), dtype=jnp.float32)

    # Typical use of View in that codebase: flatten conv features -> (N, C*H*W).
    view = ViewPallas((-1, 4 * 16 * 16))
    y = view(x)
    y = jax.block_until_ready(y)

    ref = x.reshape(2, 4 * 16 * 16)
    assert y.shape == (2, 1024), y.shape
    assert y.dtype == x.dtype
    assert bool(jnp.array_equal(y, ref)), "view output mismatch"

    # Robustness check: a size that is NOT a multiple of 128 — handled directly
    # by the HBM->HBM DMA, no padding / post-slice needed.
    key2 = jax.random.PRNGKey(1)
    x2 = jax.random.normal(key2, (2, 3, 5, 7), dtype=jnp.float32)  # 210 elements
    y2 = jax.block_until_ready(ViewPallas((-1, 105))(x2))
    assert y2.shape == (2, 105)
    assert bool(jnp.array_equal(y2, x2.reshape(2, 105))), "odd-size path mismatch"

    # Exercise the multi-chunk DMA path (normally used only for large buffers).
    key3 = jax.random.PRNGKey(2)
    x3 = jax.random.normal(key3, (64, 4096), dtype=jnp.float32)  # 1 MiB
    flat3 = x3.reshape(-1)
    y3 = jax.block_until_ready(_dma_copy_flat(flat3, n_chunks=2))
    assert bool(jnp.array_equal(y3, flat3)), "chunked DMA path mismatch"

    print("KERNEL_OK")
</pallas_src>

<mosaic_0001>
module attributes {stable_mosaic.version = 11 : i64} {
  func.func @kernel(%arg0: memref<1x2048xf32, #tpu.memory_space<any>>, %arg1: memref<1x2048xf32, #tpu.memory_space<any>>, %arg2: memref<1x!tpu.dma_semaphore, #tpu.memory_space<semaphore_mem>>) attributes {dimension_semantics = [], scalar_prefetch = 0 : i64, scratch_operands = 1 : i64, tpu.core_type = #tpu.core_type<tc>} {
    %c0_i32 = arith.constant 0 : i32
    %c0_i32_0 = arith.constant 0 : i32
    %c0_i32_1 = arith.constant 0 : i32
    %c0_i32_2 = arith.constant 0 : i32
    %0 = tpu.memref_slice %arg0[%c0_i32, %c0_i32_2] : memref<1x2048xf32, #tpu.memory_space<any>> -> memref<1x2048xf32, #tpu.memory_space<any>>
    %1 = tpu.memref_squeeze %0 : memref<1x2048xf32, #tpu.memory_space<any>> -> memref<2048xf32, #tpu.memory_space<any>>
    %c0_i32_3 = arith.constant 0 : i32
    %2 = tpu.memref_slice %arg1[%c0_i32_0, %c0_i32_3] : memref<1x2048xf32, #tpu.memory_space<any>> -> memref<1x2048xf32, #tpu.memory_space<any>>
    %3 = tpu.memref_squeeze %2 : memref<1x2048xf32, #tpu.memory_space<any>> -> memref<2048xf32, #tpu.memory_space<any>>
    %4 = tpu.memref_slice %arg2[%c0_i32_1] : memref<1x!tpu.dma_semaphore, #tpu.memory_space<semaphore_mem>> -> memref<1x!tpu.dma_semaphore, #tpu.memory_space<semaphore_mem>>
    %5 = tpu.memref_squeeze %4 : memref<1x!tpu.dma_semaphore, #tpu.memory_space<semaphore_mem>> -> memref<!tpu.dma_semaphore, #tpu.memory_space<semaphore_mem>>
    tpu.enqueue_dma source(%1 : memref<2048xf32, #tpu.memory_space<any>>) target(%3 : memref<2048xf32, #tpu.memory_space<any>>) target_semaphore(%5 : memref<!tpu.dma_semaphore, #tpu.memory_space<semaphore_mem>>)
    %c0_i32_4 = arith.constant 0 : i32
    %c0_i32_5 = arith.constant 0 : i32
    %c0_i32_6 = arith.constant 0 : i32
    %c0_i32_7 = arith.constant 0 : i32
    %6 = tpu.memref_slice %arg0[%c0_i32_4, %c0_i32_7] : memref<1x2048xf32, #tpu.memory_space<any>> -> memref<1x2048xf32, #tpu.memory_space<any>>
    %7 = tpu.memref_squeeze %6 : memref<1x2048xf32, #tpu.memory_space<any>> -> memref<2048xf32, #tpu.memory_space<any>>
    %c0_i32_8 = arith.constant 0 : i32
    %8 = tpu.memref_slice %arg1[%c0_i32_5, %c0_i32_8] : memref<1x2048xf32, #tpu.memory_space<any>> -> memref<1x2048xf32, #tpu.memory_space<any>>
    %9 = tpu.memref_squeeze %8 : memref<1x2048xf32, #tpu.memory_space<any>> -> memref<2048xf32, #tpu.memory_space<any>>
    %10 = tpu.memref_slice %arg2[%c0_i32_6] : memref<1x!tpu.dma_semaphore, #tpu.memory_space<semaphore_mem>> -> memref<1x!tpu.dma_semaphore, #tpu.memory_space<semaphore_mem>>
    %11 = tpu.memref_squeeze %10 : memref<1x!tpu.dma_semaphore, #tpu.memory_space<semaphore_mem>> -> memref<!tpu.dma_semaphore, #tpu.memory_space<semaphore_mem>>
    tpu.wait_dma2 semaphore(%11 : memref<!tpu.dma_semaphore, #tpu.memory_space<semaphore_mem>>) src(%7 : memref<2048xf32, #tpu.memory_space<any>>) dst(%9 : memref<2048xf32, #tpu.memory_space<any>>)
    return
  }
}

</mosaic_0001>

<bundles_post_ra>
// kernel: tpu_custom_call.1
= control target key start
LH: loop header
LB: loop body
LE: loop exit
PB: predicated region body
PF: predicated region fallthrough
CT: control target
= control target key end

     0   :  { %s33_s6 = smov [#allocation2]   ;;  %s34_s7 = smov [#allocation3]   ;;  %s52_s0 = inlined_call_operand.hbm [shape: f32[1,2048], index: 0, kind: input, shape index: {}]   ;;  %s53_s1 = inlined_call_operand.hbm [shape: f32[1,2048], index: 1, kind: output, shape index: {}]  }
   0x1   :  { %s35_s8 = smov 0  }
   0x2   :  { %18 = dma.general %s52_s0, 256, %s53_s1, %s33_s6, %s34_s7, [#allocation4], %s35_s8, 0  }
   0x3   :  { %31 = dma.done.wait [#allocation2], 256 }
   0x4   :  { %32 = vsyncadd [#allocation2], 4294967040 }
   0x5   :  { %21 = vsyncmov [#allocation2] }
   0x8   :  { %s22_s13 = vpop.sfrf %21 }
   0x9   :  { %p27_p0 = scmp.ne.s32.totalorder %s22_s13, 0 }
   0xb   :  { %26 = shalt.err (%p27_p0)  }

</bundles_post_ra>
